<compile_context>
chip_gen: v7x
topology: tpu7x:2x2x1
jax: 0.10.0
libtpu: 0.0.40
codegen_flags: <defaults>
</compile_context>

<pallas_src>
import jax
import jax.numpy as jnp
from jax.experimental import pallas as pl
from jax.experimental.pallas import tpu as pltpu


# Lane-dense copy tile: 1024 lanes (multiple of 128) x up-to-256 sublanes.
# 256 * 1024 * 4 B = 1 MiB per f32 tile; double-buffered input + output
# ≈ 4 MiB live VMEM.
_LANE_TILE = 1024
_ROW_TILE = 256  # multiple of 32 → valid sublane tiling for f32/bf16/i8


def _identity_copy_kernel(x_ref, o_ref):
    # Pure pass-through: load the VMEM tile, store it unchanged.
    o_ref[...] = x_ref[...]


@jax.jit
def _pallas_identity_copy(x: jax.Array) -> jax.Array:
    """Tiled, pipelined Pallas copy of `x`.

    Only used when a kernel is explicitly requested; the default identity
    path never launches it.
    """
    orig_shape = x.shape
    dtype = x.dtype
    total = x.size

    if total == 0:
        return x

    flat = x.reshape(-1)

    # Pad (statically) so the flat tensor reshapes exactly into
    # (rows, _LANE_TILE), with rows either the full (short) sublane extent or
    # a multiple of _ROW_TILE — no ragged blocks, no masked partial stores.
    pad = (-total) % _LANE_TILE
    rows = (total + pad) // _LANE_TILE
    if rows > _ROW_TILE:
        row_pad = (-rows) % _ROW_TILE
        pad += row_pad * _LANE_TILE
        rows += row_pad
        tile_rows = _ROW_TILE
    else:
        # Block spans the full (short) sublane axis → always a legal tile.
        tile_rows = rows

    if pad:
        flat = jnp.pad(flat, (0, pad))
    x2 = flat.reshape(rows, _LANE_TILE)

    bytes_accessed = 2 * rows * _LANE_TILE * jnp.dtype(dtype).itemsize

    out2 = pl.pallas_call(
        _identity_copy_kernel,
        out_shape=jax.ShapeDtypeStruct((rows, _LANE_TILE), dtype),
        grid=(rows // tile_rows,),
        in_specs=[pl.BlockSpec((tile_rows, _LANE_TILE), lambda i: (i, 0))],
        out_specs=pl.BlockSpec((tile_rows, _LANE_TILE), lambda i: (i, 0)),
        # Reuse the input HBM buffer for the output (no second allocation).
        input_output_aliases={0: 0},
        compiler_params=pltpu.CompilerParams(
            # Parallel grid axis lets Mosaic shard the copy across both
            # TensorCores on v7x; neutral on single-TC v5e/v6e.
            dimension_semantics=("parallel",),
        ),
        cost_estimate=pl.CostEstimate(
            flops=0, transcendentals=0, bytes_accessed=int(bytes_accessed)),
    )(x2)

    out_flat = out2.reshape(-1)
    if pad:
        out_flat = out_flat[:total]
    return out_flat.reshape(orig_shape)


def identity_first_stage_forward(x: jax.Array, use_pallas_copy: bool = False) -> jax.Array:
    """IdentityFirstStage.forward.

    Default: zero-cost pass-through (the optimal implementation of identity —
    no HBM traffic, no kernel launch).  Set use_pallas_copy=True to route
    through the tiled Pallas copy kernel instead.
    """
    if not use_pallas_copy:
        return x
    return _pallas_identity_copy(x)


class IdentityFirstStage:
    """JAX/Pallas mirror of the PyTorch IdentityFirstStage module."""

    def __init__(self, *args, vq_interface: bool = False, **kwargs):
        self.vq_interface = vq_interface

    def encode(self, x, *args, **kwargs):
        return identity_first_stage_forward(x)

    def decode(self, x, *args, **kwargs):
        return identity_first_stage_forward(x)

    def quantize(self, x, *args, **kwargs):
        x = identity_first_stage_forward(x)
        if self.vq_interface:
            return (x, None, [None, None, None])
        return x

    def __call__(self, x, *args, **kwargs):
        return identity_first_stage_forward(x)


if __name__ == "__main__":
    key = jax.random.PRNGKey(0)
    # NCHW, matching the PyTorch first-stage convention.
    x = jax.random.normal(key, (2, 4, 16, 16), dtype=jnp.float32)

    model = IdentityFirstStage(vq_interface=False)

    # Default (optimal) identity path: no kernel launched.
    y = jax.block_until_ready(model(x))
    assert y.shape == x.shape and y.dtype == x.dtype
    assert bool(jnp.all(y == x))

    # Explicitly exercise the Pallas copy kernel (single-block branch).
    y_k = jax.block_until_ready(identity_first_stage_forward(x, use_pallas_copy=True))
    assert y_k.shape == x.shape and y_k.dtype == x.dtype
    assert bool(jnp.all(y_k == x))

    # Exercise the multi-tile (grid > 1) + row-padding branch.
    x_big = jax.random.normal(key, (2, 3, 256, 256), dtype=jnp.float32)
    y_big = jax.block_until_ready(identity_first_stage_forward(x_big, use_pallas_copy=True))
    assert y_big.shape == x_big.shape and y_big.dtype == x_big.dtype
    assert bool(jnp.all(y_big == x_big))

    # vq_interface branch structure.
    model_vq = IdentityFirstStage(vq_interface=True)
    q, emb_loss, info = model_vq.quantize(x)
    q = jax.block_until_ready(q)
    assert bool(jnp.all(q == x)) and emb_loss is None and info == [None, None, None]

    print("KERNEL_OK")
</pallas_src>

<mosaic_0001>
module attributes {stable_mosaic.version = 11 : i64} {
  func.func @_identity_copy_kernel(%arg0: i32, %arg1: memref<2x1024xf32, #tpu.memory_space<vmem>>, %arg2: memref<2x1024xf32, #tpu.memory_space<vmem>>) attributes {dimension_semantics = [#tpu.dimension_semantics<parallel>], iteration_bounds = array<i64: 1>, scalar_prefetch = 0 : i64, scratch_operands = 0 : i64, tpu.core_type = #tpu.core_type<tc>, window_params = [{transform_indices = @transform_0, window_bounds = array<i64: 2, 1024>}, {transform_indices = @transform_1, window_bounds = array<i64: 2, 1024>}]} {
    %c0 = arith.constant 0 : index
    %c0_0 = arith.constant 0 : index
    %0 = vector.load %arg1[%c0, %c0_0] : memref<2x1024xf32, #tpu.memory_space<vmem>>, vector<2x1024xf32>
    %c0_1 = arith.constant 0 : index
    %c0_2 = arith.constant 0 : index
    %1 = vector.load %arg2[%c0_1, %c0_2] : memref<2x1024xf32, #tpu.memory_space<vmem>>, vector<2x1024xf32>
    tpu.vector_store %arg2[%c0_1, %c0_2], %0 {strides = array<i32>} : memref<2x1024xf32, #tpu.memory_space<vmem>>, vector<2x1024xf32>,
    return
  }
  func.func @transform_0(%arg0: i32) -> (i32, i32) {
    %c0_i32 = arith.constant 0 : i32
    %c0_i32_0 = arith.constant 0 : i32
    return %arg0, %c0_i32 : i32, i32
  }
  func.func @transform_1(%arg0: i32) -> (i32, i32) {
    %c0_i32 = arith.constant 0 : i32
    %c0_i32_0 = arith.constant 0 : i32
    return %arg0, %c0_i32 : i32, i32
  }
}

</mosaic_0001>

<bundles_post_ra>
// kernel: _pallas_identity_copy.1
= control target key start
LH: loop header
LB: loop body
LE: loop exit
PB: predicated region body
PF: predicated region fallthrough
CT: control target
= control target key end

     0   :  { %s38_s0 = inlined_call_operand.vmem [shape: f32[2,1024], index: 0, kind: input, shape index: {}, may-alias: {0,1}]   ;;  %s39_s1 = inlined_call_operand.vmem [shape: f32[2,1024], index: 1, kind: output, shape index: {}, may-alias: {0,1}]  }
   0x1   :  { %v8_v0 = vld [vmem:[%s38_s0] sm:$0xff]  ;;  %v9_v1 = vld [vmem:[%s38_s0 + $0x8] sm:$0xff] }
   0x2   :  { %10 = vst [vmem:[%s39_s1] sm:$0xff] %v8_v0  ;;  %11 = vst [vmem:[%s39_s1 + $0x8] sm:$0xff] %v9_v1 }

</bundles_post_ra>
